<compile_context>
chip_gen: v5e
topology: v5e:2x2
jax: 0.10.0
libtpu: 0.0.40
codegen_flags: <defaults>
</compile_context>

<pallas_src>
import functools

import jax
import jax.numpy as jnp
from jax.experimental import pallas as pl
from jax.experimental.pallas import tpu as pltpu


# All in-kernel constants are Python floats (never jnp arrays) so kernels do not
# capture array constants.
NEG_INF = -1e30            # finite "masked" score; safe for f32 exp
DENOM_EPS = 1e-20          # isolated-node guard for the softmax denominator
_FEAT_RESIDENT_BYTES = 4 * 1024 * 1024   # keep feat/el VMEM-resident below this


def _round_up(n, m):
    return ((n + m - 1) // m) * m


def _pad_rows(n):
    """Pad node count so tiles stay large and (8,128)-aligned."""
    if n <= 512:
        return _round_up(n, 8)
    return _round_up(n, 256)


def _pick_tile(n, maximum=512):
    """Largest aligned tile <= maximum that divides n (n already padded)."""
    if n <= maximum:
        return n
    for t in (512, 256):
        if t <= maximum and n % t == 0:
            return t
    return 256


@functools.lru_cache(maxsize=1)
def _vmem_limit_bytes():
    """Generation-aware scoped-VMEM limit (v5e/v6e: 128 MiB, v7x: 64 MiB/TC)."""
    try:
        cap = int(pltpu.get_tpu_info().vmem_capacity_bytes)
    except Exception:
        cap = 64 * 1024 * 1024
    return int(min(cap * 3 // 4, 96 * 1024 * 1024))


# ----------------------------------------------------------------------------
# BatchNorm1d statistics (training-mode batch stats, eps=1e-5).
# Two-pass (mean-subtracted) to avoid E[x^2]-E[x]^2 cancellation.  The *apply*
# step is fused into the first layer's projection kernel (scale/shift vectors).
# ----------------------------------------------------------------------------
def _bn_sum_kernel(x_ref, s_ref):
    @pl.when(pl.program_id(0) == 0)
    def _():
        s_ref[...] = jnp.zeros(s_ref.shape, s_ref.dtype)
    s_ref[...] += jnp.sum(x_ref[...], axis=0, keepdims=True)


def _bn_var_kernel(x_ref, mean_ref, v_ref):
    @pl.when(pl.program_id(0) == 0)
    def _():
        v_ref[...] = jnp.zeros(v_ref.shape, v_ref.dtype)
    d = x_ref[...] - mean_ref[...]
    v_ref[...] += jnp.sum(d * d, axis=0, keepdims=True)


def batch_norm_scale_shift(x_pad, gamma, beta, n_real, *, eps=1e-5):
    """x_pad: (N_pad, D) with padded rows exactly zero.  Returns (scale, shift)."""
    n_pad, D = x_pad.shape
    tn = _pick_tile(n_pad, 512)
    nt = n_pad // tn
    cp = pltpu.CompilerParams(dimension_semantics=("arbitrary",),
                              vmem_limit_bytes=_vmem_limit_bytes())

    s = pl.pallas_call(
        _bn_sum_kernel,
        out_shape=jax.ShapeDtypeStruct((1, D), jnp.float32),
        grid_spec=pltpu.PrefetchScalarGridSpec(
            num_scalar_prefetch=0, grid=(nt,),
            in_specs=[pl.BlockSpec((tn, D), lambda i: (i, 0))],
            out_specs=pl.BlockSpec((1, D), lambda i: (0, 0))),
        compiler_params=cp,
    )(x_pad)
    mean = s / jnp.float32(n_real)

    v = pl.pallas_call(
        _bn_var_kernel,
        out_shape=jax.ShapeDtypeStruct((1, D), jnp.float32),
        grid_spec=pltpu.PrefetchScalarGridSpec(
            num_scalar_prefetch=0, grid=(nt,),
            in_specs=[pl.BlockSpec((tn, D), lambda i: (i, 0)),
                      pl.BlockSpec((1, D), lambda i: (0, 0))],
            out_specs=pl.BlockSpec((1, D), lambda i: (0, 0))),
        compiler_params=cp,
    )(x_pad, mean)

    # Padded rows are exact zeros: each contributes mean^2 to the centered sum.
    v = v - jnp.float32(n_pad - n_real) * mean * mean
    var = v / jnp.float32(n_real)
    inv = jax.lax.rsqrt(var + eps)
    scale = inv * gamma
    shift = beta - mean * scale
    return scale, shift


# ----------------------------------------------------------------------------
# GATConv projection kernel (all heads fused):
#   hb   = h * bn_scale + bn_shift        (only layer 0, fused BN apply)
#   feat = hb @ W                         (N, H*F)   stored bf16
#   elr  = feat @ [AL | AR]               (N, 2H)    el = [:, :H], er = [:, H:]
#   res  = hb @ Wres                      (only when residual needs a projection)
# ----------------------------------------------------------------------------
def _proj_kernel(*refs, has_bn, has_res_proj):
    i = 0
    h_ref = refs[i]; i += 1
    if has_bn:
        scale_ref, shift_ref = refs[i], refs[i + 1]; i += 2
    w_ref, alr_ref = refs[i], refs[i + 1]; i += 2
    if has_res_proj:
        rw_ref = refs[i]; i += 1
    feat_ref, elr_ref = refs[i], refs[i + 1]; i += 2
    if has_res_proj:
        res_ref = refs[i]

    hb = h_ref[...]                                            # (tn, Din)
    if has_bn:
        hb = hb * scale_ref[...] + shift_ref[...]
    feat = jnp.dot(hb, w_ref[...], preferred_element_type=jnp.float32)
    feat_ref[...] = feat.astype(feat_ref.dtype)                # bf16 store
    elr_ref[...] = jnp.dot(feat, alr_ref[...], preferred_element_type=jnp.float32)
    if has_res_proj:
        res_ref[...] = jnp.dot(hb, rw_ref[...], preferred_element_type=jnp.float32)


# ----------------------------------------------------------------------------
# GATConv edge-softmax + aggregation kernel, tiled (v-tile, u-tile) with a
# flash-style online softmax.  s[v,u,h] = leaky_relu(el[u,h] + er[v,h]) masked
# by the adjacency.  Scratch (m, l, acc) is written once per block; empty
# adjacency blocks (scalar-prefetched nnz table) skip the compute body.
# ----------------------------------------------------------------------------
def _attn_kernel(nnz_ref, *refs, H, F, tu, negative_slope, has_res, apply_act,
                 u_resident):
    if has_res:
        feat_ref, elt_ref, er_ref, adj_ref, res_ref, o_ref, m_sc, l_sc, acc_sc = refs
    else:
        feat_ref, elt_ref, er_ref, adj_ref, o_ref, m_sc, l_sc, acc_sc = refs
        res_ref = None

    vi = pl.program_id(0)
    ui = pl.program_id(1)
    ns = float(negative_slope)

    @pl.when(ui == 0)
    def _init():
        m_sc[...] = jnp.full(m_sc.shape, NEG_INF, m_sc.dtype)
        l_sc[...] = jnp.zeros(l_sc.shape, l_sc.dtype)
        acc_sc[...] = jnp.zeros(acc_sc.shape, acc_sc.dtype)

    @pl.when(nnz_ref[vi, ui] > 0)
    def _compute():
        edge = adj_ref[...] != 0                               # (tv, tu) bool
        if u_resident:
            u0 = ui * tu
            fu = feat_ref[pl.ds(u0, tu), :]                    # (tu, HF) bf16
            elt = elt_ref[:, pl.ds(u0, tu)]                    # (H, tu)
        else:
            fu = feat_ref[...]
            elt = elt_ref[...]
        er = er_ref[...]                                       # (tv, H)

        m_prev = m_sc[...]
        l_prev = l_sc[...]
        acc_prev = acc_sc[...]

        m_cols, l_cols, acc_cols = [], [], []
        for hh in range(H):                                    # H small & static
            s = er[:, hh:hh + 1] + elt[hh:hh + 1, :]           # (tv, tu)
            s = jnp.maximum(s, ns * s)                         # leaky_relu (ns<1)
            s = jnp.where(edge, s, NEG_INF)

            m_p = m_prev[:, hh:hh + 1]
            m_n = jnp.maximum(m_p, jnp.max(s, axis=-1, keepdims=True))
            corr = jnp.exp(m_p - m_n)
            p = jnp.where(edge, jnp.exp(s - m_n), 0.0)         # (tv, tu)

            l_cols.append(corr * l_prev[:, hh:hh + 1]
                          + jnp.sum(p, axis=-1, keepdims=True))
            acc_cols.append(
                corr * acc_prev[:, hh * F:(hh + 1) * F]
                + jnp.dot(p.astype(jnp.bfloat16), fu[:, hh * F:(hh + 1) * F],
                          preferred_element_type=jnp.float32))
            m_cols.append(m_n)

        # single write per scratch per block (no per-head strided RMW stores)
        m_sc[...] = jnp.concatenate(m_cols, axis=1)
        l_sc[...] = jnp.concatenate(l_cols, axis=1)
        acc_sc[...] = jnp.concatenate(acc_cols, axis=1)

    @pl.when(ui == pl.num_programs(1) - 1)
    def _finalize():
        inv = 1.0 / jnp.maximum(l_sc[...], DENOM_EPS)          # (tv, H)
        cols = [acc_sc[:, hh * F:(hh + 1) * F] * inv[:, hh:hh + 1]
                for hh in range(H)]
        rst = jnp.concatenate(cols, axis=1)                    # (tv, HF) lane-dense
        if has_res:
            rst = rst + res_ref[...]
        if apply_act:                                          # ELU(alpha=1)
            rst = jnp.where(rst > 0, rst, jnp.exp(rst) - 1.0)
        o_ref[...] = rst.astype(o_ref.dtype)


def gat_conv(h, params, adj_i8, block_nnz, *, residual_mode, apply_act,
             bn_scale=None, bn_shift=None, negative_slope=0.2):
    """h: (N_pad, Din) f32; adj_i8: (N_pad, N_pad) int8 (adj[v,u]!=0 <=> edge u->v).
    block_nnz: (nv, nu) int32 per-block edge counts (shared across layers).
    Returns the layer output lane-dense as (N_pad, H*F) (== flatten(1) layout)."""
    n_pad, Din = h.shape
    H, F = params['attn_l'].shape
    HF = H * F
    has_res_proj = residual_mode == "proj"
    has_res = residual_mode != "none"
    has_bn = bn_scale is not None
    # identity residual would need a materialized BN(h); not used in this config.
    assert not (has_bn and residual_mode == "identity")

    vmem_limit = _vmem_limit_bytes()

    # ---- projection kernel (heads + attn vectors + BN apply fused) -----------
    tn = _pick_tile(n_pad, 512)
    in_specs = [pl.BlockSpec((tn, Din), lambda i: (i, 0))]
    inputs = [h]
    if has_bn:
        in_specs += [pl.BlockSpec((1, Din), lambda i: (0, 0)),
                     pl.BlockSpec((1, Din), lambda i: (0, 0))]
        inputs += [bn_scale, bn_shift]
    in_specs += [pl.BlockSpec((Din, HF), lambda i: (0, 0)),
                 pl.BlockSpec((HF, 2 * H), lambda i: (0, 0))]
    inputs += [params['w'], params['alr_mat']]
    out_shapes = [jax.ShapeDtypeStruct((n_pad, HF), jnp.bfloat16),
                  jax.ShapeDtypeStruct((n_pad, 2 * H), jnp.float32)]
    out_specs = [pl.BlockSpec((tn, HF), lambda i: (i, 0)),
                 pl.BlockSpec((tn, 2 * H), lambda i: (i, 0))]
    if has_res_proj:
        in_specs.append(pl.BlockSpec((Din, HF), lambda i: (0, 0)))
        inputs.append(params['res_w'])
        out_shapes.append(jax.ShapeDtypeStruct((n_pad, HF), jnp.float32))
        out_specs.append(pl.BlockSpec((tn, HF), lambda i: (i, 0)))

    proj_outs = pl.pallas_call(
        functools.partial(_proj_kernel, has_bn=has_bn, has_res_proj=has_res_proj),
        out_shape=tuple(out_shapes),
        grid_spec=pltpu.PrefetchScalarGridSpec(
            num_scalar_prefetch=0, grid=(n_pad // tn,),
            in_specs=in_specs, out_specs=out_specs),
        compiler_params=pltpu.CompilerParams(
            dimension_semantics=("parallel",), vmem_limit_bytes=vmem_limit),
    )(*inputs)

    feat, elr = proj_outs[0], proj_outs[1]
    if has_res_proj:
        res = proj_outs[2]
    else:
        res = h if residual_mode == "identity" else None       # identity: add h

    el_t = jnp.transpose(elr[:, :H])                           # (H, N_pad), tiny
    er = elr[:, H:]                                            # (N_pad, H)

    # ---- tiled edge-softmax / aggregation kernel -----------------------------
    nv, nu = block_nnz.shape
    tv, tu = n_pad // nv, n_pad // nu

    # Keep feat / el fully VMEM-resident (constant index_map => DMA'd once)
    # when they fit the budget; avoids re-streaming feat once per v-tile.
    u_resident = (n_pad * HF * 2 + n_pad * H * 4) <= _FEAT_RESIDENT_BYTES
    if u_resident:
        feat_spec = pl.BlockSpec((n_pad, HF), lambda vi, ui, nnz: (0, 0))
        elt_spec = pl.BlockSpec((H, n_pad), lambda vi, ui, nnz: (0, 0))
    else:
        feat_spec = pl.BlockSpec((tu, HF), lambda vi, ui, nnz: (ui, 0))
        elt_spec = pl.BlockSpec((H, tu), lambda vi, ui, nnz: (0, ui))

    attn_in_specs = [
        feat_spec,                                             # source features
        elt_spec,                                              # el, row layout
        pl.BlockSpec((tv, H), lambda vi, ui, nnz: (vi, 0)),    # er (dest tile)
        pl.BlockSpec((tv, tu), lambda vi, ui, nnz: (vi, ui)),  # adjacency int8
    ]
    attn_inputs = [feat, el_t, er, adj_i8]
    if has_res:
        attn_in_specs.append(pl.BlockSpec((tv, HF), lambda vi, ui, nnz: (vi, 0)))
        attn_inputs.append(res)

    kernel = functools.partial(_attn_kernel, H=H, F=F, tu=tu,
                               negative_slope=float(negative_slope),
                               has_res=has_res, apply_act=apply_act,
                               u_resident=u_resident)
    out = pl.pallas_call(
        kernel,
        out_shape=jax.ShapeDtypeStruct((n_pad, HF), jnp.float32),
        grid_spec=pltpu.PrefetchScalarGridSpec(
            num_scalar_prefetch=1,
            grid=(nv, nu),
            in_specs=attn_in_specs,
            out_specs=pl.BlockSpec((tv, HF), lambda vi, ui, nnz: (vi, 0)),
            scratch_shapes=[pltpu.VMEM((tv, H), jnp.float32),    # running max
                            pltpu.VMEM((tv, H), jnp.float32),    # running denom
                            pltpu.VMEM((tv, HF), jnp.float32)]), # accumulator
        compiler_params=pltpu.CompilerParams(
            dimension_semantics=("parallel", "arbitrary"),
            vmem_limit_bytes=vmem_limit),
    )(block_nnz, *attn_inputs)
    return out


# ----------------------------------------------------------------------------
# Parameter construction (deterministic, matching GATConv.__init__ shapes)
# ----------------------------------------------------------------------------
def make_layer_params(key, in_dim, out_feats, num_heads, residual):
    k1, k2, k3, k4 = jax.random.split(key, 4)
    H, F = num_heads, out_feats
    scale = 1.0 / jnp.sqrt(jnp.float32(in_dim))
    # fc: Linear(in_dim, H*F, bias=False), heads fused along lanes.
    w = jax.random.normal(k1, (in_dim, H * F), jnp.float32) * scale
    attn_l = jax.random.normal(k2, (H, F), jnp.float32) * 0.1
    attn_r = jax.random.normal(k3, (H, F), jnp.float32) * 0.1
    # Head-block-diagonal matrices: (feat @ al_mat)[:, h] == <feat_h, attn_l[h]>.
    eye_h = jnp.eye(H, dtype=jnp.float32)
    al_mat = (attn_l[:, :, None] * eye_h[:, None, :]).reshape(H * F, H)
    ar_mat = (attn_r[:, :, None] * eye_h[:, None, :]).reshape(H * F, H)
    alr_mat = jnp.concatenate([al_mat, ar_mat], axis=1)        # (H*F, 2H) fused

    if not residual:
        mode, res_w = "none", None
    elif in_dim == H * F:
        mode, res_w = "identity", None          # DGL uses Identity -> add h
    else:
        mode = "proj"
        res_w = jax.random.normal(k4, (in_dim, H * F), jnp.float32) * scale
    return dict(w=w, attn_l=attn_l, attn_r=attn_r, alr_mat=alr_mat,
                res_w=res_w, residual_mode=mode)


# ----------------------------------------------------------------------------
# Pure-JAX reference (correctness sanity check)
# ----------------------------------------------------------------------------
def gat_conv_ref(h, p, adj, *, residual_mode, apply_act, negative_slope=0.2):
    N = h.shape[0]
    H, F = p['attn_l'].shape
    feat = (h @ p['w']).reshape(N, H, F)
    el = jnp.einsum('nhf,hf->nh', feat, p['attn_l'])           # source term
    er = jnp.einsum('nhf,hf->nh', feat, p['attn_r'])           # dest term
    e = er[:, None, :] + el[None, :, :]                        # (Nv, Nu, H)
    e = jnp.where(e >= 0, e, negative_slope * e)
    mask = (adj != 0)[:, :, None]
    e = jnp.where(mask, e, -1e30)
    pm = jnp.exp(e - jnp.max(e, axis=1, keepdims=True))
    pm = jnp.where(mask, pm, 0.0)
    denom = jnp.maximum(jnp.sum(pm, axis=1, keepdims=True), 1e-20)
    alpha = pm / denom
    rst = jnp.einsum('vuh,uhf->vhf', alpha, feat)
    if residual_mode == "identity":
        rst = rst + h.reshape(N, H, F)
    elif residual_mode == "proj":
        rst = rst + (h @ p['res_w']).reshape(N, H, F)
    if apply_act:
        rst = jnp.where(rst > 0, rst, jnp.exp(rst) - 1.0)
    return rst.reshape(N, H * F)


def gat_forward_ref(x, adj, bn_gamma, bn_beta, layer_params):
    mean = jnp.mean(x, axis=0, keepdims=True)
    var = jnp.mean((x - mean) ** 2, axis=0, keepdims=True)
    h = (x - mean) * jax.lax.rsqrt(var + 1e-5) * bn_gamma + bn_beta
    for p in layer_params[:-1]:
        h = gat_conv_ref(h, p, adj, residual_mode=p['residual_mode'],
                         apply_act=True)
    p = layer_params[-1]
    o = gat_conv_ref(h, p, adj, residual_mode=p['residual_mode'], apply_act=False)
    N = o.shape[0]
    H, F = p['attn_l'].shape
    return jnp.mean(o.reshape(N, H, F), axis=1)


# ----------------------------------------------------------------------------
# Full GAT forward
# ----------------------------------------------------------------------------
def gat_forward(x, adj_i8, bn_gamma, bn_beta, layer_params):
    N = x.shape[0]
    n_pad = _pad_rows(N)
    if n_pad != N:                                             # pad -> aligned tiles
        x = jnp.pad(x, ((0, n_pad - N), (0, 0)))
        adj_i8 = jnp.pad(adj_i8, ((0, n_pad - N), (0, n_pad - N)))

    # BN statistics (apply is fused into the first projection kernel).
    bn_scale, bn_shift = batch_norm_scale_shift(x, bn_gamma, bn_beta, N)

    # Block-level edge counts, computed once and shared by every layer.
    tv = tu = _pick_tile(n_pad, 512)
    nv, nu = n_pad // tv, n_pad // tu
    block_nnz = jnp.sum((adj_i8 != 0).reshape(nv, tv, nu, tu),
                        axis=(1, 3), dtype=jnp.int32)

    h = x
    first = True
    for p in layer_params[:-1]:
        h = gat_conv(h, p, adj_i8, block_nnz,
                     residual_mode=p['residual_mode'], apply_act=True,
                     bn_scale=bn_scale if first else None,
                     bn_shift=bn_shift if first else None)     # already flatten(1)
        first = False
    p = layer_params[-1]
    o = gat_conv(h, p, adj_i8, block_nnz,
                 residual_mode=p['residual_mode'], apply_act=False,
                 bn_scale=bn_scale if first else None,
                 bn_shift=bn_shift if first else None)
    H, F = p['attn_l'].shape
    return jnp.mean(o[:N].reshape(N, H, F), axis=1)            # mean over heads


if __name__ == "__main__":
    # GAT(g, num_layers=2, in_dim=8, num_hidden=8, out_dim=4,
    #     heads=[4, 4, 2], activation=ELU, feat_drop=0, attn_drop=0,
    #     negative_slope=0.2, residual=True)
    N, in_dim, num_hidden, out_dim = 16, 8, 8, 4
    num_layers, heads, residual = 2, [4, 4, 2], True

    key = jax.random.PRNGKey(0)
    kx, kadj, k0, k1, k2 = jax.random.split(key, 5)

    x = jax.random.normal(kx, (N, in_dim), jnp.float32)

    # Random graph with self-loops: adj[v, u] != 0 iff edge u -> v.  int8 mask.
    adj = jax.random.uniform(kadj, (N, N)) < 0.3
    adj = jnp.logical_or(adj, jnp.eye(N, dtype=bool)).astype(jnp.int8)

    # BatchNorm1d(in_dim) init: gamma=1, beta=0 (kept 2D for TPU layout).
    bn_gamma = jnp.ones((1, in_dim), jnp.float32)
    bn_beta = jnp.zeros((1, in_dim), jnp.float32)

    layer_cfgs = [
        dict(in_dim=in_dim, out=num_hidden, heads=heads[0], residual=False),
        dict(in_dim=num_hidden * heads[0], out=num_hidden, heads=heads[1],
             residual=residual),
        dict(in_dim=num_hidden * heads[1], out=out_dim, heads=heads[2],
             residual=residual),
    ]
    layer_params = [
        make_layer_params(k, c['in_dim'], c['out'], c['heads'], c['residual'])
        for k, c in zip([k0, k1, k2], layer_cfgs)
    ]

    logits = gat_forward(x, adj, bn_gamma, bn_beta, layer_params)
    logits = jax.block_until_ready(logits)

    ref = gat_forward_ref(x, adj, bn_gamma, bn_beta, layer_params)
    assert logits.shape == (N, out_dim)
    err = float(jnp.max(jnp.abs(logits - ref)))
    # Tolerance accounts for the bf16 feature / probability path in the kernel.
    assert jnp.allclose(logits, ref, rtol=3e-2, atol=3e-2), err

    print("KERNEL_OK")
</pallas_src>

<mosaic_0001>
module attributes {stable_mosaic.version = 11 : i64} {
  func.func @_bn_sum_kernel(%arg0: i32, %arg1: memref<16x8xf32, #tpu.memory_space<vmem>>, %arg2: memref<1x8xf32, #tpu.memory_space<vmem>>) attributes {dimension_semantics = [#tpu.dimension_semantics<arbitrary>], iteration_bounds = array<i64: 1>, scalar_prefetch = 0 : i64, scratch_operands = 0 : i64, tpu.core_type = #tpu.core_type<tc>, window_params = [{transform_indices = @transform_0, window_bounds = array<i64: 16, 8>}, {pipeline_mode = #tpu.pipeline_mode<synchronous>, transform_indices = @transform_1, window_bounds = array<i64: 1, 8>}]} {
    %c0_i32 = arith.constant 0 : i32
    %0 = arith.cmpi eq, %arg0, %c0_i32 : i32
    %1 = arith.extui %0 : i1 to i32
    %c0_i32_0 = arith.constant 0 : i32
    %2 = arith.cmpi ne, %1, %c0_i32_0 : i32
    scf.if %2 {
      %cst_6 = arith.constant 0.000000e+00 : f32
      %9 = vector.broadcast %cst_6 : f32 to vector<1x8xf32>
      %c0_7 = arith.constant 0 : index
      %c0_8 = arith.constant 0 : index
      %10 = vector.load %arg2[%c0_7, %c0_8] : memref<1x8xf32, #tpu.memory_space<vmem>>, vector<1x8xf32>
      tpu.vector_store %arg2[%c0_7, %c0_8], %9 {strides = array<i32>} : memref<1x8xf32, #tpu.memory_space<vmem>>, vector<1x8xf32>,
    } else {
    }
    %c0 = arith.constant 0 : index
    %c0_1 = arith.constant 0 : index
    %3 = vector.load %arg2[%c0, %c0_1] : memref<1x8xf32, #tpu.memory_space<vmem>>, vector<1x8xf32>
    %c0_2 = arith.constant 0 : index
    %c0_3 = arith.constant 0 : index
    %4 = vector.load %arg1[%c0_2, %c0_3] : memref<16x8xf32, #tpu.memory_space<vmem>>, vector<16x8xf32>
    %cst = arith.constant dense<0.000000e+00> : vector<8xf32>
    %5 = vector.multi_reduction <add>, %4, %cst [0] : vector<16x8xf32> to vector<8xf32>
    %6 = vector.shape_cast %5 : vector<8xf32> to vector<1x8xf32>
    %7 = arith.addf %3, %6 : vector<1x8xf32>
    %c0_4 = arith.constant 0 : index
    %c0_5 = arith.constant 0 : index
    %8 = vector.load %arg2[%c0_4, %c0_5] : memref<1x8xf32, #tpu.memory_space<vmem>>, vector<1x8xf32>
    tpu.vector_store %arg2[%c0_4, %c0_5], %7 {strides = array<i32>} : memref<1x8xf32, #tpu.memory_space<vmem>>, vector<1x8xf32>,
    return
  }
  func.func @transform_0(%arg0: i32) -> (i32, i32) {
    %c0_i32 = arith.constant 0 : i32
    %c0_i32_0 = arith.constant 0 : i32
    return %arg0, %c0_i32 : i32, i32
  }
  func.func @transform_1(%arg0: i32) -> (i32, i32) {
    %c0_i32 = arith.constant 0 : i32
    %c0_i32_0 = arith.constant 0 : i32
    %c0_i32_1 = arith.constant 0 : i32
    return %c0_i32, %c0_i32_0 : i32, i32
  }
}

</mosaic_0001>

<bundles_post_ra>
// kernel: tpu_custom_call.1
= control target key start
LH: loop header
LB: loop body
LE: loop exit
PB: predicated region body
PF: predicated region fallthrough
CT: control target
= control target key end

     0   :  { %vm13_vm0 = vcmask 57344   ;;  %vm18_vm1 = vcmask 64512   ;;  %v75_v2 = vmov 0.0   ;;  %s98_s0 = inlined_call_operand.vmem [shape: f32[16,8], index: 0, kind: input, shape index: {}]   ;;  %s99_s1 = inlined_call_operand.hbm [shape: f32[1,8], index: 1, kind: output, shape index: {}]  }
   0x1   :  { %v16_v0 = vld [vmem:[%s98_s0] sm:$0xff]  ;;  %v17_v1 = vld [vmem:[%s98_s0 + $0x8] sm:$0xff]  ;;  %14 = vst.msk [vmem:[#allocation2] sm:$0x1] %vm13_vm0, %v75_v2 }
   0x2   :  { %v19_v3 = vsel %vm18_vm1, %v16_v0, 0.0  ;;  %v20_v4 = vsel %vm18_vm1, %v17_v1, 0.0 }
   0x3   :  { %6 = vsyncpa [#allocation3], 0  ;;  %v21_v5 = vadd.f32 %v20_v4, %v19_v3  ;;  %s76_s10 = smov [#allocation2]   ;;  %s38_s0 = sshll.u32 %s99_s1, 4  ;;  %s39_s0 = int_to_ptr.hbm [resolvable:$true] %s38_s0 }
   0x4   :  { %s36_s11 = sshll.u32 %s76_s10, 4  ;;  %s37_s11 = int_to_ptr.vmem [resolvable:$true] %s36_s11 }
   0x5   :  { %v22_v6 = vrot.slane %v21_v5, 4 }
   0x7   :  { %v23_v7 = vadd.f32 %v22_v6, %v21_v5 }
   0x8   :  { %v15_v11 = vld [vmem:[#allocation2] sm:$0x1] }
   0x9   :  { %v24_v8 = vrot.slane %v23_v7, 2 }
   0xb   :  { %v25_v9 = vadd.f32 %v24_v8, %v23_v7 }
   0xd   :  { %v26_v10 = vrot.slane %v25_v9, 1 }
   0xf   :  { %v27_v12 = vadd.f32 %v26_v10, %v25_v9 }
  0x11   :  { %v28_v13 = vadd.f32 %v27_v12, %v15_v11 }
  0x13   :  { %30 = vst.msk [vmem:[#allocation2] sm:$0x1] %vm13_vm0, %v28_v13 }
  0x14   :  { %41 = dma.vmem_to_hbm [thread:$0]  %s37_s11, 16, %s39_s0, [#allocation3]  }
  0x15   :  { %73 = dma.done.wait [#allocation3], 16  }
  0x16   :  { %74 = vsyncadd [#allocation3], 4294967280 }
  0x17   :  { %46 = vsyncpa [#allocation3], 1 }

</bundles_post_ra>
